<compile_context>
chip_gen: v6e
topology: v6e:2x2x1
jax: 0.10.0
libtpu: 0.0.40
codegen_flags: <defaults>
</compile_context>

<pallas_src>
import jax
import jax.numpy as jnp
from jax.experimental import pallas as pl
from jax.experimental.pallas import tpu as pltpu

LANE = 128


# ---------------------------------------------------------------------------
# helpers
# ---------------------------------------------------------------------------
def _cdiv(a, b):
    return (a + b - 1) // b


def _round_up(x, m):
    return _cdiv(x, m) * m


def _pad2(a, rows, cols, row_off=0, col_off=0):
    r, c = a.shape
    return jnp.pad(a, ((row_off, rows - r - row_off), (col_off, cols - c - col_off)))


def _choose_tiling(M, cap=1024):
    """Row tile tm (multiple of 16, <= cap) and padded M with an EVEN grid."""
    steps = max(2, 2 * _cdiv(_cdiv(M, cap), 2))   # even #grid steps (v7x dual-TC)
    tm = _round_up(_cdiv(M, steps), 16)           # bf16: 16 sublanes per vreg
    return tm, steps * tm


# ---------------------------------------------------------------------------
# fused Pallas kernel: patch-embed + cluster1 + cluster2, packed bf16 output
# ---------------------------------------------------------------------------
def _stego_fused_kernel(x_ref, wp_ref, bp_ref, wcat_ref, bcat_ref, w2b_ref, out_ref):
    """Per row tile [tm, Fp]:
         feat = x @ Wp + bp                          (extractor stub; lanes 0:F)
         cat  = feat @ [Wc1_off | Wc2a] + [bcode_off | b_c2a]   (one 256-wide dot)
         c1b  = cat[:, :Fp]                          (cluster1 + folded biases; lanes F:F+D)
         h    = relu(cat[:, Fp:])                    (cluster2 hidden; lanes 0:F)
         c2   = h @ Wc2b_off                         (cluster2 out; lanes F:F+D)
         out  = feat + c1b + c2                      (packed: feat 0:F, code F:F+D)
       bf16 MXU operands, f32 accumulation, single lane-dense bf16 store."""
    Fp = out_ref.shape[-1]
    x = x_ref[...]                                                     # [tm, Kp] bf16

    feat = jnp.dot(x, wp_ref[...], preferred_element_type=jnp.float32) + bp_ref[...]
    fb = feat.astype(jnp.bfloat16)

    cat = jnp.dot(fb, wcat_ref[...], preferred_element_type=jnp.float32) + bcat_ref[...]
    c1b = cat[:, :Fp]                      # vreg-aligned split (lane 128) -> free
    h = jnp.maximum(cat[:, Fp:], 0.0)

    c2 = jnp.dot(h.astype(jnp.bfloat16), w2b_ref[...],
                 preferred_element_type=jnp.float32)

    out_ref[...] = (feat + c1b + c2).astype(out_ref.dtype)             # bf16 store


def _stego_fused(x_flat, pp, *, tm):
    """x_flat: [M_pad, Kp] bf16 (lane-padded). Returns packed [M_pad, Fp] bf16:
    dino_feat in lanes [0, feat_dim), code in lanes [feat_dim, feat_dim+dim)."""
    M_pad, Kp = x_flat.shape
    Fp = pp["w_patch"].shape[1]
    assert M_pad % tm == 0

    return pl.pallas_call(
        _stego_fused_kernel,
        out_shape=jax.ShapeDtypeStruct((M_pad, Fp), jnp.bfloat16),
        grid_spec=pltpu.PrefetchScalarGridSpec(
            num_scalar_prefetch=0,
            grid=(M_pad // tm,),
            in_specs=[
                pl.BlockSpec((tm, Kp), lambda i: (i, 0)),      # x tile
                pl.BlockSpec((Kp, Fp), lambda i: (0, 0)),      # w_patch
                pl.BlockSpec((1, Fp), lambda i: (0, 0)),       # b_patch
                pl.BlockSpec((Fp, 2 * Fp), lambda i: (0, 0)),  # [w_c1_off | w_c2a]
                pl.BlockSpec((1, 2 * Fp), lambda i: (0, 0)),   # [b_code_off | b_c2a]
                pl.BlockSpec((Fp, Fp), lambda i: (0, 0)),      # w_c2b_off
            ],
            out_specs=pl.BlockSpec((tm, Fp), lambda i: (i, 0)),  # packed feat|code
        ),
        compiler_params=pltpu.CompilerParams(
            dimension_semantics=("parallel",),                 # megacore / dual-TC
            vmem_limit_bytes=32 * 1024 * 1024,
        ),
    )(x_flat, pp["w_patch"], pp["b_patch"], pp["w_cat"], pp["b_cat"], pp["w_c2b"])


# ---------------------------------------------------------------------------
# parameter prep: lane-pad, column-shift cluster heads, bf16 weights (once)
# ---------------------------------------------------------------------------
def prepare_params(params):
    kp_true, feat_dim = params["w_patch"].shape
    dim = params["w_c1"].shape[1]

    Kp = _round_up(kp_true, LANE)
    Fp = _round_up(feat_dim, LANE)
    # packed output: feat in lanes [0, feat_dim), code in [feat_dim, feat_dim+dim)
    assert feat_dim + dim <= Fp, "packed feat+code must fit one lane-padded block"
    # TODO(synk): for real DINO widths (feat_dim=384/768) widen the packed block.

    # Shift cluster-head OUTPUT columns by feat_dim so `code` lands directly next
    # to `feat` in the packed output (pack == plain add, no in-kernel roll).
    w_c1_off = _pad2(params["w_c1"], Fp, Fp, col_off=feat_dim)
    w_c2a_p = _pad2(params["w_c2a"], Fp, Fp)
    b_code_off = _pad2(params["b_c1"] + params["b_c2b"], 1, Fp, col_off=feat_dim)
    b_c2a_p = _pad2(params["b_c2a"], 1, Fp)

    padded = {
        "w_patch": _pad2(params["w_patch"], Kp, Fp).astype(jnp.bfloat16),
        "b_patch": _pad2(params["b_patch"], 1, Fp).astype(jnp.float32),
        # one [Fp, 2*Fp] weight fills the 256-wide MXU (v6e/v7x) in a single dot
        "w_cat": jnp.concatenate([w_c1_off, w_c2a_p], axis=1).astype(jnp.bfloat16),
        "b_cat": jnp.concatenate([b_code_off, b_c2a_p], axis=1).astype(jnp.float32),
        "w_c2b": _pad2(params["w_c2b"], Fp, Fp, col_off=feat_dim).astype(jnp.bfloat16),
    }
    dims = {"kp_true": kp_true, "Kp": Kp, "Fp": Fp, "feat_dim": feat_dim, "dim": dim}
    return padded, dims


# ---------------------------------------------------------------------------
# DINOStego forward (eval mode)
# ---------------------------------------------------------------------------
def dino_stego_forward(img, padded_params, dims, *, patch=4):
    """img: [B, 3, H, W] float32 (NCHW, matching the PyTorch module).
    Returns (dino_feat [B, feat_dim, Hf, Wf] bf16, code [B, dim, Hf, Wf] bf16, {})."""
    B, C, H, W = img.shape
    Hf, Wf = H // patch, W // patch
    M = B * Hf * Wf
    kp_true, Kp, Fp = dims["kp_true"], dims["Kp"], dims["Fp"]
    feat_dim, dim = dims["feat_dim"], dims["dim"]

    tm, M_pad = _choose_tiling(M)

    # ---- extractor stub pre-pass: bf16 BEFORE the 6-D transpose (half the HBM
    # traffic of this pass); row/lane padding fused into the same copy ---------
    # TODO(synk): fuse this rearrangement into the kernel by gridding over
    # (B, Hf) with an img index_map and flattening in VMEM.
    p = img.astype(jnp.bfloat16).reshape(B, C, Hf, patch, Wf, patch)
    p = jnp.transpose(p, (0, 2, 4, 1, 3, 5)).reshape(M, kp_true)
    x = jnp.pad(p, ((0, M_pad - M), (0, Kp - kp_true)))

    # ---- fused patch-embed + dropout(identity in eval) + cluster heads -------
    packed = _stego_fused(x, padded_params, tm=tm)           # [M_pad, Fp] bf16

    nhwc = packed[:M].reshape(B, Hf, Wf, Fp)
    # slice real channels first, then one narrow bf16 NCHW transpose per output
    dino_feat = jnp.transpose(nhwc[..., :feat_dim], (0, 3, 1, 2))
    code = jnp.transpose(nhwc[..., feat_dim:feat_dim + dim], (0, 3, 1, 2))
    output = {}  # training-only entries (stego-loss, end_time) skipped in eval
    return dino_feat, code, output


# ---------------------------------------------------------------------------
def make_params(key, *, in_ch=3, patch=4, feat_dim=32, dim=16):
    ks = jax.random.split(key, 7)
    s = 0.02
    return {
        # extractor stub (patch embed): [C*P*P, feat_dim]
        "w_patch": s * jax.random.normal(ks[0], (in_ch * patch * patch, feat_dim), jnp.float32),
        "b_patch": jnp.zeros((1, feat_dim), jnp.float32),
        # cluster1: Conv2d(feat_dim, dim, 1)   -> [feat_dim, dim]
        "w_c1": s * jax.random.normal(ks[1], (feat_dim, dim), jnp.float32),
        "b_c1": s * jax.random.normal(ks[2], (1, dim), jnp.float32),
        # cluster2: Conv2d(feat_dim, feat_dim, 1) -> ReLU -> Conv2d(feat_dim, dim, 1)
        "w_c2a": s * jax.random.normal(ks[3], (feat_dim, feat_dim), jnp.float32),
        "b_c2a": s * jax.random.normal(ks[4], (1, feat_dim), jnp.float32),
        "w_c2b": s * jax.random.normal(ks[5], (feat_dim, dim), jnp.float32),
        "b_c2b": s * jax.random.normal(ks[6], (1, dim), jnp.float32),
    }


def _reference_forward(img, params, *, patch=4):
    """Pure-JAX f32 reference of the same forward (for correctness check)."""
    B, C, H, W = img.shape
    Hf, Wf = H // patch, W // patch
    p = img.reshape(B, C, Hf, patch, Wf, patch)
    p = jnp.transpose(p, (0, 2, 4, 1, 3, 5)).reshape(B * Hf * Wf, C * patch * patch)
    feat = p @ params["w_patch"] + params["b_patch"]
    c1 = feat @ params["w_c1"] + params["b_c1"]
    h = jnp.maximum(feat @ params["w_c2a"] + params["b_c2a"], 0.0)
    c2 = h @ params["w_c2b"] + params["b_c2b"]
    code = c1 + c2
    feat_dim = params["w_patch"].shape[1]
    dim = params["w_c1"].shape[1]
    return (jnp.transpose(feat.reshape(B, Hf, Wf, feat_dim), (0, 3, 1, 2)),
            jnp.transpose(code.reshape(B, Hf, Wf, dim), (0, 3, 1, 2)))


if __name__ == "__main__":
    key = jax.random.PRNGKey(0)
    k_img, k_pos, k_par = jax.random.split(key, 3)

    B, C, H, W = 2, 3, 32, 32          # patch=4 -> 8x8 feature map, M = 128
    img = jax.random.normal(k_img, (B, C, H, W), jnp.float32)
    pos_img = jax.random.normal(k_pos, (B, C, H, W), jnp.float32)  # unused in eval

    params = make_params(k_par, in_ch=C, patch=4, feat_dim=32, dim=16)
    padded_params, dims = prepare_params(params)

    dino_feat, code, output = dino_stego_forward(img, padded_params, dims, patch=4)
    jax.block_until_ready((dino_feat, code))

    assert dino_feat.shape == (B, 32, H // 4, W // 4)
    assert code.shape == (B, 16, H // 4, W // 4)

    # correctness vs pure-f32 reference (tolerance covers bf16 operands + bf16 store)
    ref_feat, ref_code = _reference_forward(img, params, patch=4)
    assert float(jnp.max(jnp.abs(dino_feat - ref_feat))) < 1e-2
    assert float(jnp.max(jnp.abs(code - ref_code))) < 1e-2

    print("KERNEL_OK")
</pallas_src>

<mosaic_0001>
module attributes {stable_mosaic.version = 11 : i64} {
  func.func @_stego_fused_kernel(%arg0: i32, %arg1: memref<64x128xbf16, #tpu.memory_space<vmem>>, %arg2: memref<128x128xbf16, #tpu.memory_space<vmem>>, %arg3: memref<1x128xf32, #tpu.memory_space<vmem>>, %arg4: memref<128x256xbf16, #tpu.memory_space<vmem>>, %arg5: memref<1x256xf32, #tpu.memory_space<vmem>>, %arg6: memref<128x128xbf16, #tpu.memory_space<vmem>>, %arg7: memref<64x128xbf16, #tpu.memory_space<vmem>>) attributes {dimension_semantics = [#tpu.dimension_semantics<parallel>], iteration_bounds = array<i64: 2>, scalar_prefetch = 0 : i64, scratch_operands = 0 : i64, tpu.core_type = #tpu.core_type<tc>, window_params = [{transform_indices = @transform_0, window_bounds = array<i64: 64, 128>}, {pipeline_mode = #tpu.pipeline_mode<synchronous>, transform_indices = @transform_1, window_bounds = array<i64: 128, 128>}, {pipeline_mode = #tpu.pipeline_mode<synchronous>, transform_indices = @transform_2, window_bounds = array<i64: 1, 128>}, {pipeline_mode = #tpu.pipeline_mode<synchronous>, transform_indices = @transform_3, window_bounds = array<i64: 128, 256>}, {pipeline_mode = #tpu.pipeline_mode<synchronous>, transform_indices = @transform_4, window_bounds = array<i64: 1, 256>}, {pipeline_mode = #tpu.pipeline_mode<synchronous>, transform_indices = @transform_5, window_bounds = array<i64: 128, 128>}, {transform_indices = @transform_6, window_bounds = array<i64: 64, 128>}]} {
    %c0 = arith.constant 0 : index
    %c0_0 = arith.constant 0 : index
    %0 = vector.load %arg1[%c0, %c0_0] : memref<64x128xbf16, #tpu.memory_space<vmem>>, vector<64x128xbf16>
    %c0_1 = arith.constant 0 : index
    %c0_2 = arith.constant 0 : index
    %1 = vector.load %arg2[%c0_1, %c0_2] : memref<128x128xbf16, #tpu.memory_space<vmem>>, vector<128x128xbf16>
    %cst = arith.constant dense<0.000000e+00> : vector<64x128xf32>
    %2 = tpu.matmul %0, %1, %cst {dimension_numbers = #tpu.dot_dimension_numbers<[1], [0], [0], [1], [0, 0, 1, 1], [], []>} : vector<64x128xbf16>, vector<128x128xbf16>, vector<64x128xf32> -> vector<64x128xf32>
    %c0_3 = arith.constant 0 : index
    %c0_4 = arith.constant 0 : index
    %3 = vector.load %arg3[%c0_3, %c0_4] : memref<1x128xf32, #tpu.memory_space<vmem>>, vector<1x128xf32>
    %4 = vector.broadcast %3 : vector<1x128xf32> to vector<64x128xf32>
    %5 = arith.addf %2, %4 : vector<64x128xf32>
    %6 = arith.truncf %5 : vector<64x128xf32> to vector<64x128xbf16>
    %c0_5 = arith.constant 0 : index
    %c0_6 = arith.constant 0 : index
    %7 = vector.load %arg4[%c0_5, %c0_6] : memref<128x256xbf16, #tpu.memory_space<vmem>>, vector<128x256xbf16>
    %cst_7 = arith.constant dense<0.000000e+00> : vector<64x256xf32>
    %8 = tpu.matmul %6, %7, %cst_7 {dimension_numbers = #tpu.dot_dimension_numbers<[1], [0], [0], [1], [0, 0, 1, 1], [], []>} : vector<64x128xbf16>, vector<128x256xbf16>, vector<64x256xf32> -> vector<64x256xf32>
    %c0_8 = arith.constant 0 : index
    %c0_9 = arith.constant 0 : index
    %9 = vector.load %arg5[%c0_8, %c0_9] : memref<1x256xf32, #tpu.memory_space<vmem>>, vector<1x256xf32>
    %10 = vector.broadcast %9 : vector<1x256xf32> to vector<64x256xf32>
    %11 = arith.addf %8, %10 : vector<64x256xf32>
    %12 = vector.extract_strided_slice %11 {offsets = [0, 0], sizes = [64, 128], strides = [1, 1]} : vector<64x256xf32> to vector<64x128xf32>
    %13 = vector.extract_strided_slice %11 {offsets = [0, 128], sizes = [64, 128], strides = [1, 1]} : vector<64x256xf32> to vector<64x128xf32>
    %cst_10 = arith.constant 0.000000e+00 : f32
    %14 = vector.broadcast %cst_10 : f32 to vector<64x128xf32>
    %15 = arith.maximumf %13, %14 : vector<64x128xf32>
    %16 = arith.truncf %15 : vector<64x128xf32> to vector<64x128xbf16>
    %c0_11 = arith.constant 0 : index
    %c0_12 = arith.constant 0 : index
    %17 = vector.load %arg6[%c0_11, %c0_12] : memref<128x128xbf16, #tpu.memory_space<vmem>>, vector<128x128xbf16>
    %cst_13 = arith.constant dense<0.000000e+00> : vector<64x128xf32>
    %18 = tpu.matmul %16, %17, %cst_13 {dimension_numbers = #tpu.dot_dimension_numbers<[1], [0], [0], [1], [0, 0, 1, 1], [], []>} : vector<64x128xbf16>, vector<128x128xbf16>, vector<64x128xf32> -> vector<64x128xf32>
    %19 = arith.addf %5, %12 : vector<64x128xf32>
    %20 = arith.addf %19, %18 : vector<64x128xf32>
    %21 = arith.truncf %20 : vector<64x128xf32> to vector<64x128xbf16>
    %c0_14 = arith.constant 0 : index
    %c0_15 = arith.constant 0 : index
    %22 = vector.load %arg7[%c0_14, %c0_15] : memref<64x128xbf16, #tpu.memory_space<vmem>>, vector<64x128xbf16>
    tpu.vector_store %arg7[%c0_14, %c0_15], %21 {strides = array<i32>} : memref<64x128xbf16, #tpu.memory_space<vmem>>, vector<64x128xbf16>,
    return
  }
  func.func @transform_0(%arg0: i32) -> (i32, i32) {
    %c0_i32 = arith.constant 0 : i32
    %c0_i32_0 = arith.constant 0 : i32
    return %arg0, %c0_i32 : i32, i32
  }
  func.func @transform_1(%arg0: i32) -> (i32, i32) {
    %c0_i32 = arith.constant 0 : i32
    %c0_i32_0 = arith.constant 0 : i32
    %c0_i32_1 = arith.constant 0 : i32
    return %c0_i32, %c0_i32_0 : i32, i32
  }
  func.func @transform_2(%arg0: i32) -> (i32, i32) {
    %c0_i32 = arith.constant 0 : i32
    %c0_i32_0 = arith.constant 0 : i32
    %c0_i32_1 = arith.constant 0 : i32
    return %c0_i32, %c0_i32_0 : i32, i32
  }
  func.func @transform_3(%arg0: i32) -> (i32, i32) {
    %c0_i32 = arith.constant 0 : i32
    %c0_i32_0 = arith.constant 0 : i32
    %c0_i32_1 = arith.constant 0 : i32
    return %c0_i32, %c0_i32_0 : i32, i32
  }
  func.func @transform_4(%arg0: i32) -> (i32, i32) {
    %c0_i32 = arith.constant 0 : i32
    %c0_i32_0 = arith.constant 0 : i32
    %c0_i32_1 = arith.constant 0 : i32
    return %c0_i32, %c0_i32_0 : i32, i32
  }
  func.func @transform_5(%arg0: i32) -> (i32, i32) {
    %c0_i32 = arith.constant 0 : i32
    %c0_i32_0 = arith.constant 0 : i32
    %c0_i32_1 = arith.constant 0 : i32
    return %c0_i32, %c0_i32_0 : i32, i32
  }
  func.func @transform_6(%arg0: i32) -> (i32, i32) {
    %c0_i32 = arith.constant 0 : i32
    %c0_i32_0 = arith.constant 0 : i32
    return %arg0, %c0_i32 : i32, i32
  }
}

</mosaic_0001>

<bundles_post_ra>
// kernel: tpu_custom_call.1
= control target key start
LH: loop header
LB: loop body
LE: loop exit
PB: predicated region body
PF: predicated region fallthrough
CT: control target
= control target key end

     0   :  { %11 = vsyncpa [#allocation3], 0  ;;  %s1781_s0 = inlined_call_operand.hbm [shape: bf16[128,128], index: 0, kind: input, shape index: {}]   ;;  %s1782_s1 = inlined_call_operand.hbm [shape: bf16[128,128], index: 1, kind: input, shape index: {}]   ;;  %s1783_s2 = inlined_call_operand.vmem [shape: f32[1,128], index: 2, kind: input, shape index: {}]   ;;  %s1784_s3 = inlined_call_operand.hbm [shape: bf16[128,256], index: 3, kind: input, shape index: {}]   ;;  %s1785_s4 = inlined_call_operand.vmem [shape: f32[1,256], index: 4, kind: input, shape index: {}]   ;;  %s1786_s5 = inlined_call_operand.hbm [shape: bf16[128,128], index: 5, kind: input, shape index: {}]   ;;  %s1787_s6 = inlined_call_operand.hbm [shape: bf16[128,128], index: 6, kind: output, shape index: {}]  }
   0x1   :  { %13 = vsyncpa [#allocation3 + $0x1], 0 }
   0x2   :  { %14 = vsyncpa [#allocation6], 0 }
   0x3   :  { %15 = vsyncpa [#allocation9], 0 }
   0x4   :  { %16 = vsyncpa [#allocation4], 0 }
   0x5   :  { %18 = vsyncpa [#allocation4 + $0x1], 0  ;;  %s1524_s21 = smov 0   ;;  %s1526_s22 = smov 0  }
   0x6   :  { %s1528_s23 = smov 0   ;;  %s1530_s24 = smov 0  }
   0x7 LB: > { %s1545_s25 = sadd.s32 4294967295, %s1475_s24   ;;  %s983_s26 = sadd.s32 4294967294, %s1475_s24   ;;  %s1475_s24 = sphi %s1530_s24, %s1814_s24   ;;  %s1471_s23 = sphi %s1528_s23, %s1813_s23   ;;  %s1467_s22 = sphi %s1526_s22, %s1812_s22   ;;  %s1463_s21 = sphi %s1524_s21, %s1811_s21  }
   0x8   : > { %p44_p0 = scmp.ne.s32.totalorder %s1467_s22, %s1463_s21  ;;  %p1788_p1 = scmp.eq.s32.totalorder %s1545_s25, 0 }
   0x9   : > { %p173_p2 = scmp.eq.s32.totalorder %s1545_s25, 1  ;;  %p179_p3 = scmp.eq.s32.totalorder %s983_s26, 1 }
   0xa   : > { %p1554_p4 = por %p1788_p1, %p44_p0  ;;  %p984_p5 = scmp.ge.s32.totalorder %s1475_s24, 1 }
   0xb   : > { %p1559_p6 = por %p179_p3, %p44_p0  ;;  %p186_p7 = scmp.lt.s32.totalorder %s1475_s24, 3 }
   0xc   : > { %s1794_s27 = scalar_select %p1554_p4, 1, 0 }
   0xd   : > { %s1795_s28 = scalar_select %p1559_p6, 1, 0 }
   0xe   : > { %p1564_p8 = pnand %p984_p5, %p186_p7  ;;  %s1477_s30 = smov [#allocation5]  }
   0xf   : > { %s198_s7 = sshll.u32 %s1477_s30, 4  ;;  %s1478_s9 = smov [#allocation7]   ;;  %s199_s7 = int_to_ptr.vmem [resolvable:$true] %s198_s7 }
  0x10   : > { %s1796_s29 = scalar_select %p1564_p8, 1, 0 }
  0x11   : > { %p1185_p9 = pneg %p1564_p8  ;;  %s214_s10 = sshll.u32 %s1478_s9, 4  ;;  %s215_s10 = int_to_ptr.vmem [resolvable:$true] %s214_s10 }
  0x12   : > { %s1308_s11 = scalar_lea.vmem %s199_s7, 1024  ;;  %p1316_p5 = scmp.lt.s32.totalorder %s199_s7, %s199_s7 }
  0x13   : > { %p1573_p11 = pnand %p1185_p9, %p1788_p1  ;;  %p1309_p13 = scmp.ne.s32.totalorder %s199_s7, %s1308_s11 }
  0x14   : > { %p1317_p7 = scmp.lt.s32.totalorder %s1308_s11, %s1308_s11 }
  0x15   : > { %p1299_p12 = pneg %p1573_p11 }
  0x16   : > { %p1318_p10 = por %p1317_p7, %p1316_p5 }
  0x17   : > { %p1311_p0 = pnand %p1309_p13, %p1299_p12 }
  0x19   : > { %p1312_p3 = pneg %p1311_p0 }
  0x1b   : > { %p1319_p9 = pnand %p1318_p10, %p1312_p3 }
  0x1d   : > { %1322 = shalt.err (!%p1319_p9)
}
  0x1e   : > { %s1789_s12 = smov 64   ;;  %s1790_s13 = smov 4  }
  0x1f   : > { %1188 = dma.hbm_to_vmem [thread:$0]  (!%p1573_p11), %s1782_s1, 1024, %s199_s7, [#allocation6], %s1789_s12, %s1789_s12, %s1790_s13  }
  0x20   : > { %s1334_s16 = scalar_lea.vmem %s215_s10, 2048  ;;  %p1342_p10 = scmp.lt.s32.totalorder %s215_s10, %s215_s10 }
  0x21   : > { %p1335_p13 = scmp.ne.s32.totalorder %s215_s10, %s1334_s16  ;;  %p1343_p3 = scmp.lt.s32.totalorder %s1334_s16, %s1334_s16 }
  0x23   : > { %p1337_p0 = pnand %p1335_p13, %p1299_p12  ;;  %p1344_p7 = por %p1343_p3, %p1342_p10 }
  0x25   : > { %p1338_p5 = pneg %p1337_p0 }
  0x27   : > { %p1345_p9 = pnand %p1344_p7, %p1338_p5 }
  0x29   : > { %1348 = shalt.err (!%p1345_p9)
}
  0x2a   : > { %s1481_s17 = smov 128   ;;  %s1482_s18 = smov 8  }
  0x2b   : > { %1191 = dma.hbm_to_vmem [thread:$0]  (!%p1573_p11), %s1784_s3, 2048, %s215_s10, [#allocation6], %s1481_s17, %s1481_s17, %s1482_s18  }
  0x2c   : > { %s1483_s26 = smov [#allocation8]   ;;  %s1599_s7 = sadd.s32 1, %s1475_s24  }
  0x2d   : > { %s230_s30 = sshll.u32 %s1483_s26, 4  ;;  %s231_s30 = int_to_ptr.vmem [resolvable:$true] %s230_s30 }
  0x2e   : > { %s1360_s9 = scalar_lea.vmem %s231_s30, 1024  ;;  %p1368_p10 = scmp.lt.s32.totalorder %s231_s30, %s231_s30 }
  0x2f   : > { %p1361_p13 = scmp.ne.s32.totalorder %s231_s30, %s1360_s9  ;;  %p1369_p3 = scmp.lt.s32.totalorder %s1360_s9, %s1360_s9 }
  0x31   : > { %p1363_p0 = pnand %p1361_p13, %p1299_p12  ;;  %p1370_p7 = por %p1369_p3, %p1368_p10 }
  0x33   : > { %p1364_p5 = pneg %p1363_p0 }
  0x35   : > { %p1371_p9 = pnand %p1370_p7, %p1364_p5 }
  0x37   : > { %1374 = shalt.err (!%p1371_p9)
}
  0x38   : > { %1194 = dma.hbm_to_vmem [thread:$0]  (!%p1573_p11), %s1786_s5, 1024, %s231_s30, [#allocation9], %s1789_s12, %s1789_s12, %s1790_s13  }
  0x39   : > { %s28_s14 = ssub.s32 %s1475_s24, %s1599_s7  ;;  %s31_s8 = sadd.s32 1, %s1471_s23 }
  0x3a   : > { %p29_p12 = scmp.eq.s32.totalorder %s28_s14, 0  ;;  %p38_p13 = scmp.ne.s32.totalorder %s1471_s23, %s1467_s22 }
  0x3b   : > { %p39_p0 = scmp.eq.s32.totalorder %s1475_s24, 0  ;;  %p1206_p5 = scmp.lt.s32.totalorder %s1475_s24, 2 }
  0x3c   : > { %s1620_s15 = scalar_select %p29_p12, %s1471_s23, %s31_s8  }
  0x3d   : > { %p40_p10 = por %p39_p0, %p38_p13  ;;  %p1624_p3 = por %p173_p2, %p38_p13 }
  0x3e   : > { %s244_s17 = sand.u32 1, %s1471_s23   ;;  %s1048_s18 = sshll.u32 %s1475_s24, 9 }
  0x3f   : > { %s1798_s16 = scalar_select %p1624_p3, 1, 0 }
  0x40   : > { %s989_s19 = sshll.u32 %s244_s17, 5  ;;  %s1633_s30 = scalar_lea.hbm %s1781_s0, %s1048_s18 }
  0x41   : > { %s248_s9 = scalar_lea.vmem [#allocation2], %s989_s19  ;;  %p1635_p11 = pnand %p1206_p5, %p40_p10 }
  0x42   : > { %s255_s10 = sshll.u32 %s248_s9, 4  ;;  %s1641_s14 = scalar_lea.sflag [#allocation3], %s244_s17  ;;  %s1639_s10 = int_to_ptr.vmem [resolvable:$true] %s255_s10 }
  0x43   : > { %s1375_s8 = scalar_lea.hbm %s1633_s30, 512  ;;  %p1377_p7 = pneg %p1635_p11 }
  0x44   : > { %p1376_p2 = scmp.ne.s32.totalorder %s1633_s30, %s1375_s8  ;;  %s1380_s19 = scalar_lea.hbm %s1781_s0, 1024 }
  0x45   : > { %p1381_p13 = scmp.lt.s32.totalorder %s1633_s30, %s1781_s0  ;;  %p1382_p0 = scmp.lt.s32.totalorder %s1380_s19, %s1375_s8 }
  0x46   : > { %p1378_p9 = pnand %p1377_p7, %p1376_p2 }
  0x47   : > { %p1383_p5 = por %p1382_p0, %p1381_p13 }
  0x48   : > { %p1379_p12 = pneg %p1378_p9 }
  0x4a   : > { %p1384_p10 = pnand %p1383_p5, %p1379_p12 }
  0x4c   : > { %1387 = shalt.err (!%p1384_p10)
}
  0x4d   : > { %s1388_s17 = scalar_lea.vmem %s1639_s10, 512  ;;  %s1484_s12 = smov [#allocation2]  }
  0x4e   : > { %p1389_p1 = scmp.ne.s32.totalorder %s1639_s10, %s1388_s17  ;;  %s1393_s13 = sshll.u32 %s1484_s12, 4  ;;  %s1394_s13 = int_to_ptr.vmem [resolvable:$false] %s1393_s13 }
  0x4f   : > { %s1395_s18 = scalar_lea.vmem %s1394_s13, 1024  ;;  %p1396_p9 = scmp.lt.s32.totalorder %s1639_s10, %s1394_s13 }
  0x50   : > { %p1391_p6 = pnand %p1389_p1, %p1377_p7  ;;  %p1397_p3 = scmp.lt.s32.totalorder %s1395_s18, %s1388_s17 }
  0x52   : > { %p1392_p2 = pneg %p1391_p6  ;;  %p1398_p4 = por %p1397_p3, %p1396_p9 }
  0x54   : > { %p1399_p8 = pnand %p1398_p4, %p1392_p2 }
  0x56   : > { %1402 = shalt.err (!%p1399_p8)
}
  0x57   : > { %s1800_s8 = smov 4   ;;  %s1801_s20 = smov 64  }
  0x58   : > { %1198 = dma.hbm_to_vmem [thread:$0]  (!%p1635_p11), %s1633_s30, 512, %s1639_s10, %s1641_s14, %s1801_s20, %s1801_s20, %s1800_s8  }
  0x59   : > { %p1802_p1 = scmp.ne.s32.totalorder %s1796_s29, 0 }
  0x5a   : > { %s1668_s12 = sand.u32 (!%p1802_p1), 1, %s1467_s22   ;;  %p1803_p4 = scmp.ne.s32.totalorder (!%p1802_p1), %s1794_s27, 0 }
  0x5b   : > { %267 = sbr.rel (%p1802_p1) target bundleno = 785 (0x311), region = 44  ;;  %s993_s13 = sshll.u32 (!%p1802_p1), %s1668_s12, 5 }
  0x5c   : > { %s270_s19 = scalar_lea.sflag (!%p1802_p1), [#allocation3], %s1668_s12  ;;  %s1674_s11 = scalar_lea.vmem (!%p1802_p1), [#allocation2], %s993_s13 }
  0x60   : > { %1446 = dma.done.wait (%p1803_p4), %s270_s19, 512  }
  0x61   : > { %1448 = vsyncadd (%p1803_p4), %s270_s19, 4294966784  ;;  %p1804_p6 = scmp.eq.s32.totalorder %s1545_s25, 0 }
  0x63   : > { %1450 = dma.done.wait (%p1804_p6), [#allocation6], 3072   ;;  %p1805_p8 = pmov %p1804_p6 }
  0x64   : > { %p1806_p3 = pmov %p1804_p6 }
  0x65   : > { %1452 = vsyncadd (%p1805_p8), [#allocation6], 4294964224 }
  0x66   : > { %1454 = dma.done.wait (%p1806_p3), [#allocation9], 1024   ;;  %p1807_p11 = pmov %p1806_p3 }
  0x67   : > { %v1253_v0 = vld [vmem:[#allocation5 + $0x38] sm:$0xff]   ;;  %v1254_v1 = vld [vmem:[#allocation5 + $0x30] sm:$0xff]   ;;  %v1255_v2 = vld [vmem:[#allocation5 + $0x28] sm:$0xff]   ;;  %v1485_v28 = vmov 0   ;;  %v507_v58 = vlaneseq  ;;  %s313_s14 = scalar_lea.vmem [#allocation10], %s993_s13  ;;  %s1057_s9 = sshll.u32 %s1545_s25, 9 }
  0x68   : > { %1456 = vsyncadd (%p1807_p11), [#allocation9], 4294966272  ;;  %1105 = vmatprep.subr.bf16.mxu0 %v1253_v0  ;;  %v1256_v3 = vld [vmem:[#allocation5 + $0x20] sm:$0xff]   ;;  %v1257_v5 = vld [vmem:[#allocation5 + $0x18] sm:$0xff]   ;;  %629 = vmatprep.mubr.bf16.mxu1 %v1485_v28  ;;  %s881_s26 = sshll.u32 %s313_s14, 4  ;;  %s1738_s8 = scalar_lea.hbm %s1787_s6, %s1057_s9  ;;  %s1733_s26 = int_to_ptr.vmem [resolvable:$true] %s881_s26 }
  0x69   : > { %1106 = vmatpush3.bf16.msra.mxu0 %v1253_v0  ;;  %v1261_v4 = vld [vmem:[%s1674_s11] sm:$0xff]   ;;  %v1265_v6 = vld [vmem:[#allocation7 + $0x74] ss:$8 sps:$4 sm:$0xff]   ;;  %v1267_v7 = vld [vmem:[#allocation7 + $0x70] ss:$8 sps:$4 sm:$0xff]   ;;  %v508_v59 = vshrl.u32 %v507_v58, 7 }
  0x6a   : > { %1107 = vmatprep.subr.bf16.mxu0 %v1254_v1  ;;  %1121 = vmatprep.mubr.bf16.mxu0 %v1261_v4  ;;  %v1268_v8 = vld [vmem:[#allocation7 + $0x64] ss:$8 sps:$4 sm:$0xff]   ;;  %v1258_v9 = vld [vmem:[#allocation5 + $0x10] sm:$0xff]   ;;  %v1270_v10 = vld [vmem:[#allocation7 + $0x60] ss:$8 sps:$4 sm:$0xff]   ;;  %s868_s20 = scalar_lea.sflag [#allocation4], %s1668_s12 }
  0x6b   : > { %597 = vmatprep.subr.bf16.mxu1 %v1265_v6  ;;  %v1271_v11 = vld [vmem:[#allocation7 + $0x54] ss:$8 sps:$4 sm:$0xff]   ;;  %v1259_v12 = vld [vmem:[#allocation5 + $0x8] sm:$0xff]   ;;  %v1273_v13 = vld [vmem:[#allocation7 + $0x50] ss:$8 sps:$4 sm:$0xff]   ;;  %v513_v60 = vsub.s32 1, %v508_v59 }
  0x6c   : > { %598 = vmatpush1.bf16.msra.mxu1 %v1267_v7  ;;  %v1274_v14 = vld [vmem:[#allocation7 + $0x44] ss:$8 sps:$4 sm:$0xff]   ;;  %v1276_v15 = vld [vmem:[#allocation7 + $0x40] ss:$8 sps:$4 sm:$0xff]   ;;  %v1277_v17 = vld [vmem:[#allocation7 + $0x34] ss:$8 sps:$4 sm:$0xff]  }
  0x6d   : > { %1108 = vmatpush3.bf16.msra.mxu0 %v1254_v1  ;;  %599 = vmatprep.subr.bf16.mxu1 %v1268_v8  ;;  %v1260_v16 = vld [vmem:[#allocation5] sm:$0xff]   ;;  %v1279_v18 = vld [vmem:[#allocation7 + $0x30] ss:$8 sps:$4 sm:$0xff]   ;;  %v1262_v20 = vld [vmem:[%s1674_s11 + $0x8] sm:$0xff]   ;;  %s1403_s13 = scalar_lea.vmem %s1733_s26, 512  ;;  %p1808_p12 = scmp.ne.s32.totalorder %s1798_s16, 0 }
  0x6e   : > { %1109 = vmatprep.subr.bf16.mxu0 %v1255_v2  ;;  %v1280_v19 = vld [vmem:[#allocation7 + $0x24] ss:$8 sps:$4 sm:$0xff]   ;;  %v1263_v21 = vld [vmem:[%s1674_s11 + $0x10] sm:$0xff]   ;;  %v1264_v22 = vld [vmem:[%s1674_s11 + $0x18] sm:$0xff]   ;;  %p1404_p7 = scmp.ne.s32.totalorder %s1733_s26, %s1403_s13  ;;  %s1486_s25 = smov [#allocation10]  }
  0x6f   : > { %v1282_v23 = vld [vmem:[#allocation7 + $0x20] ss:$8 sps:$4 sm:$0xff]   ;;  %v1283_v24 = vld [vmem:[#allocation7 + $0x14] ss:$8 sps:$4 sm:$0xff]   ;;  %v1285_v25 = vld [vmem:[#allocation7 + $0x10] ss:$8 sps:$4 sm:$0xff]  }
  0x70   : > { %600 = vmatpush1.bf16.msra.mxu1 %v1270_v10  ;;  %v1286_v26 = vld [vmem:[#allocation7 + $0x4] ss:$8 sps:$4 sm:$0xff]   ;;  %v1288_v27 = vld [vmem:[#allocation7] ss:$8 sps:$4 sm:$0xff]   ;;  %v1289_v29 = vld [vmem:[#allocation8 + $0x38] sm:$0xff]   ;;  %p1405_p13 = pnand %p1404_p7, %p1808_p12  ;;  %s1407_s19 = sshll.u32 %s1486_s25, 4  ;;  %s1408_s19 = int_to_ptr.vmem [resolvable:$false] %s1407_s19 }
  0x71   : > { %1110 = vmatpush3.bf16.msra.mxu0 %v1255_v2  ;;  %601 = vmatprep.subr.bf16.mxu1 %v1271_v11  ;;  %v1290_v30 = vld [vmem:[#allocation8 + $0x30] sm:$0xff]   ;;  %v1291_v31 = vld [vmem:[#allocation8 + $0x28] sm:$0xff]   ;;  %v998_v35 = vld [vmem:[%s1783_s2] ss:$0 sm:$0xff]  ;;  %s1409_s11 = scalar_lea.vmem %s1408_s19, 1024  ;;  %p1410_p5 = scmp.lt.s32.totalorder %s1733_s26, %s1408_s19 }
  0x72   : > { %1111 = vmatprep.subr.bf16.mxu0 %v1256_v3  ;;  %v1292_v53 = vld [vmem:[#allocation8 + $0x20] sm:$0xff]   ;;  %v1293_v54 = vld [vmem:[#allocation8 + $0x18] sm:$0xff]   ;;  %v1294_v55 = vld [vmem:[#allocation8 + $0x10] sm:$0xff]   ;;  %p1406_p0 = pneg %p1405_p13  ;;  %p1411_p10 = scmp.lt.s32.totalorder %s1409_s11, %s1403_s13 }
  0x73   : > { %v1295_v56 = vld [vmem:[#allocation8 + $0x8] sm:$0xff]   ;;  %v1296_v57 = vld [vmem:[#allocation8] sm:$0xff]  }
  0x74   : > { %602 = vmatpush1.bf16.msra.mxu1 %v1273_v13  ;;  %v505_v61 = vld [vmem:[%s1785_s4] sm:$0x3]  ;;  %p1412_p2 = por %p1411_p10, %p1410_p5 }
  0x75   : > { %1112 = vmatpush3.bf16.msra.mxu0 %v1256_v3  ;;  %603 = vmatprep.subr.bf16.mxu1 %v1274_v14  ;;  %v514_v63 = vrot.slane %v505_v61, %v513_v60 }
  0x76   : > { %1113 = vmatprep.subr.bf16.mxu0 %v1257_v5  ;;  %p1413_p9 = pnand %p1412_p2, %p1406_p0 }
  0x78   : > { %604 = vmatpush1.bf16.msra.mxu1 %v1276_v15 }
  0x79   : > { %1114 = vmatpush3.bf16.msra.mxu0 %v1257_v5  ;;  %605 = vmatprep.subr.bf16.mxu1 %v1277_v17 }
  0x7a   : > { %1115 = vmatprep.subr.bf16.mxu0 %v1258_v9 }
  0x7c   : > { %606 = vmatpush1.bf16.msra.mxu1 %v1279_v18 }
  0x7d   : > { %1116 = vmatpush3.bf16.msra.mxu0 %v1258_v9  ;;  %607 = vmatprep.subr.bf16.mxu1 %v1280_v19 }
  0x7e   : > { %1117 = vmatprep.subr.bf16.mxu0 %v1259_v12 }
  0x80   : > { %608 = vmatpush1.bf16.msra.mxu1 %v1282_v23 }
  0x81   : > { %1118 = vmatpush3.bf16.msra.mxu0 %v1259_v12  ;;  %609 = vmatprep.subr.bf16.mxu1 %v1283_v24 }
  0x82   : > { %1119 = vmatprep.subr.bf16.mxu0 %v1260_v16 }
  0x84   : > { %610 = vmatpush1.bf16.msra.mxu1 %v1285_v25 }
  0x85   : > { %1120 = vmatpush3.bf16.msra.mxu0 %v1260_v16  ;;  %611 = vmatprep.subr.bf16.mxu1 %v1286_v26 }
  0x86   : > { %1129 = vmatprep.subr.bf16.mxu0 %v1289_v29 }
  0x88   : > { %1122 = vmatmul.mubr.bf16.vlgmr.msra.gmra.mxu0 %v1262_v20  ;;  %612 = vmatpush1.bf16.msra.mxu1 %v1288_v27 }
  0x89   : > { %1125 = vmatprep.mubr.bf16.mxu0 %v1263_v21  ;;  %1153 = vmatprep.subr.bf16.mxu1 %v1289_v29 }
  0x8a   : > { %1130 = vmatpush3.bf16.msra.mxu0 %v1289_v29 }
  0x8b   : > { %1131 = vmatprep.subr.bf16.mxu0 %v1290_v30 }
  0x8e   : > { %1132 = vmatpush3.bf16.msra.mxu0 %v1290_v30 }
  0x8f   : > { %1133 = vmatprep.subr.bf16.mxu0 %v1291_v31 }
  0x90   : > { %1126 = vmatmul.mubr.bf16.gmra.mxu0 %v1264_v22 }
  0x92   : > { %1134 = vmatpush3.bf16.msra.mxu0 %v1291_v31 }
  0x93   : > { %1135 = vmatprep.subr.bf16.mxu0 %v1292_v53 }
  0x96   : > { %1136 = vmatpush3.bf16.msra.mxu0 %v1292_v53 }
  0x97   : > { %1137 = vmatprep.subr.bf16.mxu0 %v1293_v54 }
  0x9a   : > { %1138 = vmatpush3.bf16.msra.mxu0 %v1293_v54 }
  0x9b   : > { %1139 = vmatprep.subr.bf16.mxu0 %v1294_v55 }
  0x9e   : > { %1140 = vmatpush3.bf16.msra.mxu0 %v1294_v55 }
  0x9f   : > { %1141 = vmatprep.subr.bf16.mxu0 %v1295_v56 }
  0xa2   : > { %1142 = vmatpush3.bf16.msra.mxu0 %v1295_v56 }
  0xa3   : > { %1143 = vmatprep.subr.bf16.mxu0 %v1296_v57 }
  0xa6   : > { %1144 = vmatpush3.bf16.msra.mxu0 %v1296_v57 }
 0x148   : > { %v1123_v32 = vpop.f32.mrf.mxu0 }
 0x149   : > { %v1703_v44 = vadd.f32 %v1123_v32, %v998_v35 }
 0x14a   : > { %v454_v33 = vpop.f32.mrf.mxu0 }
 0x14b   : > { %v1695_v37 = vadd.f32 %v998_v35, %v454_v33 }
 0x14c   : > { %v1124_v34 = vpop.f32.mrf.mxu0 }
 0x14d   : > { %v1701_v42 = vadd.f32 %v1124_v34, %v998_v35 }
 0x14e   : > { %v457_v36 = vpop.f32.mrf.mxu0 }
 0x14f   : > { %v1697_v38 = vadd.f32 %v998_v35, %v457_v36  ;;  %v486_v45 = vpack.c.bf16 %v1701_v42, %v1703_v44 }
 0x150   : > { %v1127_v39 = vpop.f32.mrf.mxu0 }
 0x151   : > { %v485_v40 = vpack.c.bf16 %v1697_v38, %v1695_v37  ;;  %v1713_v50 = vadd.f32 %v1127_v39, %v998_v35 }
 0x152   : > { %v470_v41 = vpop.f32.mrf.mxu0 }
 0x153   : > { %630 = vmatmul.mubr.bf16.vlgmr.msra.gmra.mxu1 %v485_v40  ;;  %v1707_v47 = vadd.f32 %v998_v35, %v470_v41 }
 0x154   : > { %639 = vmatprep.mubr.bf16.mxu1 %v1485_v28  ;;  %1161 = vmatpush3.bf16.msra.mxu1 %v1289_v29  ;;  %v1128_v43 = vpop.f32.mrf.mxu0 }
 0x155   : > { %1154 = vmatprep.subr.bf16.mxu1 %v1290_v30  ;;  %v1715_v51 = vadd.f32 %v1128_v43, %v998_v35 }
 0x156   : > { %v473_v46 = vpop.f32.mrf.mxu0 }
 0x157   : > { %v1709_v48 = vadd.f32 %v998_v35, %v473_v46  ;;  %v488_v52 = vpack.c.bf16 %v1715_v51, %v1713_v50  ;;  %v509_v35 = vsub.s32 0, %v508_v59 }
 0x158   : > { %1162 = vmatpush3.bf16.msra.mxu1 %v1290_v30 }
 0x159   : > { %1155 = vmatprep.subr.bf16.mxu1 %v1291_v31  ;;  %v487_v49 = vpack.c.bf16 %v1709_v48, %v1707_v47  ;;  %v510_v36 = vrot.slane %v505_v61, %v509_v35 }
 0x15b   : > { %640 = vmatmul.mubr.bf16.gmra.mxu1 %v486_v45 }
 0x15c   : > { %649 = vmatprep.mubr.bf16.mxu1 %v1485_v28  ;;  %1163 = vmatpush3.bf16.msra.mxu1 %v1291_v31 }
 0x15d   : > { %1156 = vmatprep.subr.bf16.mxu1 %v1292_v53 }
 0x160   : > { %1164 = vmatpush3.bf16.msra.mxu1 %v1292_v53 }
 0x161   : > { %1157 = vmatprep.subr.bf16.mxu1 %v1293_v54 }
 0x163   : > { %650 = vmatmul.mubr.bf16.gmra.mxu1 %v487_v49 }
 0x164   : > { %659 = vmatprep.mubr.bf16.mxu1 %v1485_v28  ;;  %1165 = vmatpush3.bf16.msra.mxu1 %v1293_v54 }
 0x165   : > { %1158 = vmatprep.subr.bf16.mxu1 %v1294_v55 }
 0x168   : > { %1166 = vmatpush3.bf16.msra.mxu1 %v1294_v55 }
 0x169   : > { %1159 = vmatprep.subr.bf16.mxu1 %v1295_v56 }
 0x16b   : > { %660 = vmatmul.mubr.bf16.gmra.mxu1 %v488_v52 }
 0x16c   : > { %1167 = vmatpush3.bf16.msra.mxu1 %v1295_v56 }
 0x16d   : > { %1160 = vmatprep.subr.bf16.mxu1 %v1296_v57 }
 0x170   : > { %1168 = vmatpush3.bf16.msra.mxu1 %v1296_v57 }
 0x213   : > { %v631_v62 = vpop.f32.mrf.mxu1 }
 0x214   : > { %v632_v43 = vadd.f32 %v631_v62, %v510_v36 }
 0x215   : > { %v633_v0 = vpop.f32.mrf.mxu1 }
 0x216   : > { %v634_v2 = vadd.f32 %v633_v0, %v514_v63  ;;  %v811_v55 = vadd.f32 %v632_v43, %v1695_v37 }
 0x217   : > { %v635_v1 = vpop.f32.mrf.mxu1 }
 0x218   : > { %v670_v6 = vmax.f32 %v634_v2, 0.0  ;;  %v636_v45 = vadd.f32 %v635_v1, %v510_v36 }
 0x219   : > { %v637_v3 = vpop.f32.mrf.mxu1 }
 0x21a   : > { %v638_v4 = vadd.f32 %v637_v3, %v514_v63  ;;  %v812_v57 = vadd.f32 %v636_v45, %v1697_v38 }
 0x21b   : > { %v641_v5 = vpop.f32.mrf.mxu1 }
 0x21c   : > { %v671_v7 = vmax.f32 %v638_v4, 0.0  ;;  %v642_v39 = vadd.f32 %v641_v5, %v510_v36 }
 0x21d   : > { %v643_v8 = vpop.f32.mrf.mxu1 }
 0x21e   : > { %v678_v9 = vpack.c.bf16 %v671_v7, %v670_v6  ;;  %v644_v11 = vadd.f32 %v643_v8, %v514_v63  ;;  %v813_v49 = vadd.f32 %v642_v39, %v1703_v44 }
 0x21f   : > { %v645_v10 = vpop.f32.mrf.mxu1 }
 0x220   : > { %1145 = vmatprep.mubr.bf16.mxu0 %v678_v9  ;;  %v672_v15 = vmax.f32 %v644_v11, 0.0  ;;  %v646_v40 = vadd.f32 %v645_v10, %v510_v36 }
 0x221   : > { %v647_v12 = vpop.f32.mrf.mxu1 }
 0x222   : > { %v648_v13 = vadd.f32 %v647_v12, %v514_v63  ;;  %v814_v52 = vadd.f32 %v646_v40, %v1701_v42 }
 0x223   : > { %v651_v14 = vpop.f32.mrf.mxu1 }
 0x224   : > { %v673_v16 = vmax.f32 %v648_v13, 0.0  ;;  %v652_v0 = vadd.f32 %v651_v14, %v510_v36 }
 0x225   : > { %v653_v17 = vpop.f32.mrf.mxu1 }
 0x226   : > { %v679_v18 = vpack.c.bf16 %v673_v16, %v672_v15  ;;  %v654_v20 = vadd.f32 %v653_v17, %v514_v63  ;;  %v815_v5 = vadd.f32 %v652_v0, %v1707_v47 }
 0x227   : > { %v655_v19 = vpop.f32.mrf.mxu1 }
 0x228   : > { %1146 = vmatmul.mubr.bf16.vlgmr.msra.gmra.mxu0 %v679_v18  ;;  %v674_v24 = vmax.f32 %v654_v20, 0.0  ;;  %v656_v1 = vadd.f32 %v655_v19, %v510_v36 }
 0x229   : > { %v657_v21 = vpop.f32.mrf.mxu1 }
 0x22a   : > { %v658_v22 = vadd.f32 %v657_v21, %v514_v63  ;;  %v816_v7 = vadd.f32 %v656_v1, %v1709_v48 }
 0x22b   : > { %v661_v23 = vpop.f32.mrf.mxu1 }
 0x22c   : > { %v675_v25 = vmax.f32 %v658_v22, 0.0  ;;  %v662_v44 = vadd.f32 %v661_v23, %v510_v36 }
 0x22d   : > { %v663_v26 = vpop.f32.mrf.mxu1 }
 0x22e   : > { %v680_v27 = vpack.c.bf16 %v675_v25, %v674_v24  ;;  %v664_v29 = vadd.f32 %v663_v26, %v514_v63  ;;  %v817_v37 = vadd.f32 %v662_v44, %v1713_v50 }
 0x22f   : > { %v665_v28 = vpop.f32.mrf.mxu1 }
 0x230   : > { %1149 = vmatprep.mubr.bf16.mxu1 %v680_v27  ;;  %v676_v32 = vmax.f32 %v664_v29, 0.0 }
 0x231   : > { %v667_v30 = vpop.f32.mrf.mxu1 }
 0x232   : > { %v668_v31 = vadd.f32 %v667_v30, %v514_v63  ;;  %v666_v63 = vadd.f32 %v665_v28, %v510_v36 }
 0x234   : > { %v677_v33 = vmax.f32 %v668_v31, 0.0  ;;  %v818_v38 = vadd.f32 %v666_v63, %v1715_v51 }
 0x236   : > { %v681_v34 = vpack.c.bf16 %v677_v33, %v676_v32 }
 0x238   : > { %1150 = vmatmul.mubr.bf16.vlgmr.msra.gmra.mxu1 %v681_v34 }
 0x2e8   : > { %v1147_v41 = vpop.f32.mrf.mxu0 }
 0x2e9   : > { %v821_v54 = vadd.f32 %v1147_v41, %v813_v49 }
 0x2ea   : > { %v780_v46 = vpop.f32.mrf.mxu0 }
 0x2eb   : > { %v819_v59 = vadd.f32 %v811_v55, %v780_v46 }
 0x2ec   : > { %v1148_v53 = vpop.f32.mrf.mxu0 }
 0x2ed   : > { %v822_v56 = vadd.f32 %v1148_v53, %v814_v52 }
 0x2ee   : > { %v783_v58 = vpop.f32.mrf.mxu0 }
 0x2ef   : > { %v1066_v60 = vpack.c.bf16 %v822_v56, %v821_v54  ;;  %v820_v61 = vadd.f32 %v812_v57, %v783_v58 }
 0x2f1   : > { %1078 = vst [vmem:[%s313_s14 + $0x8] sm:$0xff] %v1066_v60   ;;  %v1061_v62 = vpack.c.bf16 %v820_v61, %v819_v59 }
 0x2f3   : > { %1062 = vst [vmem:[%s313_s14] sm:$0xff] %v1061_v62  }
 0x2f8   : > { %v1151_v42 = vpop.f32.mrf.mxu1 }
 0x2f9   : > { %v825_v4 = vadd.f32 %v1151_v42, %v817_v37 }
 0x2fa   : > { %v796_v2 = vpop.f32.mrf.mxu1 }
 0x2fb   : > { %v823_v9 = vadd.f32 %v815_v5, %v796_v2 }
 0x2fc   : > { %v1152_v3 = vpop.f32.mrf.mxu1 }
 0x2fd   : > { %v826_v6 = vadd.f32 %v1152_v3, %v818_v38 }
 0x2fe   : > { %v799_v8 = vpop.f32.mrf.mxu1 }
 0x2ff   : > { %v1076_v50 = vpack.c.bf16 %v826_v6, %v825_v4  ;;  %v824_v51 = vadd.f32 %v816_v7, %v799_v8 }
 0x301   : > { %1080 = vst [vmem:[%s313_s14 + $0x18] sm:$0xff] %v1076_v50   ;;  %v1071_v47 = vpack.c.bf16 %v824_v51, %v823_v9 }
 0x303   : > { %1079 = vst [vmem:[%s313_s14 + $0x10] sm:$0xff] %v1071_v47  }
 0x304   : > { %1416 = shalt.err (!%p1413_p9)
}
 0x305   : > { %s1417_s27 = scalar_lea.hbm %s1738_s8, 512  ;;  %s1421_s10 = scalar_lea.hbm %s1787_s6, 1024 }
 0x306   : > { %p1418_p1 = scmp.ne.s32.totalorder %s1738_s8, %s1417_s27  ;;  %p1422_p8 = scmp.lt.s32.totalorder %s1738_s8, %s1787_s6 }
 0x307   : > { %p1423_p3 = scmp.lt.s32.totalorder %s1421_s10, %s1417_s27 }
 0x308   : > { %p1419_p4 = pnand %p1418_p1, %p1808_p12 }
 0x309   : > { %p1424_p11 = por %p1423_p3, %p1422_p8 }
 0x30a   : > { %p1420_p6 = pneg %p1419_p4 }
 0x30c   : > { %p1425_p7 = pnand %p1424_p11, %p1420_p6 }
 0x30e   : > { %1428 = shalt.err (!%p1425_p7)
}
 0x30f   : > { %s1487_s17 = smov 64   ;;  %s1488_s18 = smov 4  }
 0x310   : > { %1183 = dma.vmem_to_hbm [thread:$0]  (%p1808_p12), %s1733_s26, 512, %s1738_s8, %s868_s20, %s1487_s17, %s1487_s17, %s1488_s18  }
 0x311 PF: > { %s896_s13 = sand.u32 1, %s1463_s21   ;;  %p1809_p13 = scmp.ne.s32.totalorder %s1795_s28, 0 }
 0x312   : > { %p1810_p0 = scmp.ge.s32.totalorder %s1475_s24, 2  ;;  %s897_s25 = scalar_lea.sflag [#allocation4], %s896_s13 }
 0x314   : > { %p1200_p5 = pnand %p1810_p0, %p1809_p13 }
 0x316   : > { %p1201_p10 = pneg %p1200_p5 }
 0x318   : > { %1458 = dma.done.wait (%p1201_p10), %s897_s25, 512  }
 0x319   : > { %1460 = vsyncadd (%p1201_p10), %s897_s25, 4294966784  ;;  %p21_p2 = scmp.ge.s32.totalorder %s1599_s7, 4   ;;  %s1811_s21 = smov %s1467_s22 }
 0x31a   : > { %s1812_s22 = smov %s1471_s23  ;;  %s1813_s23 = smov %s1620_s15 }
 0x31b   : > { %s1814_s24 = smov %s1599_s7  ;;  %23 = sbr.rel (!%p21_p2) target bundleno = 7 (0x7), region = 101 }
 0x320   :  { %902 = vsyncpa [#allocation3], 1 }
 0x321   :  { %904 = vsyncpa [#allocation3 + $0x1], 1 }
 0x322   :  { %905 = vsyncpa [#allocation6], 1 }
 0x323   :  { %906 = vsyncpa [#allocation9], 1 }
 0x324   :  { %907 = vsyncpa [#allocation4], 1 }
 0x325   :  { %909 = vsyncpa [#allocation4 + $0x1], 1 }

</bundles_post_ra>
